<compile_context>
chip_gen: v6e
topology: v6e:2x2x1
jax: 0.10.0
libtpu: 0.0.40
codegen_flags: <defaults>
</compile_context>

<pallas_src>
from functools import partial

import jax
import jax.numpy as jnp
from jax.experimental import pallas as pl
from jax.experimental.pallas import tpu as pltpu


# -----------------------------------------------------------------------------
# Kernel
# -----------------------------------------------------------------------------
def _layerscale_module_kernel(x_ref, cond_ref, w_ref, o_ref):
    # x_ref:    (TILE_N, Hp)  rows of one batch element (lane-dense, Hp % 128 == 0)
    # cond_ref: (5, Hp)       fused per-batch conditioning vectors
    # w_ref:    (Hp, Hp)      dense weight^T with BN scale folded into columns, + identity
    # o_ref:    (TILE_N, Hp)
    x = x_ref[...]
    cond = cond_ref[...]
    add_in = cond[0:1, :]       # move(emb)
    add_post = cond[1:2, :]     # bn_shift + bn_scale*dense_bias + move1(emb) - move(emb)
    coef_pos = cond[2:3, :]     # alpha(emb)
    coef_neg = cond[3:4, :]     # prelu_a * alpha(emb)
    offset = cond[4:5, :]       # move2(emb)*alpha(emb) + ls_move(emb)

    t = x + add_in
    # Residual "+x" is folded into w_ref (identity added in the wrapper), so a single
    # MXU matmul + one broadcast add produces the pre-activation y.
    y = jnp.dot(t, w_ref[...], preferred_element_type=jnp.float32) + add_post
    coef = jnp.where(y >= 0, coef_pos, coef_neg)
    o_ref[...] = (coef * y + offset).astype(o_ref.dtype)             # single lane-dense store


# -----------------------------------------------------------------------------
# Wrapper
# -----------------------------------------------------------------------------
def _pick_tile_n(n, hp, *, target_rows=512, vmem_budget_bytes=16 * 2**20):
    # x + out tiles are double-buffered f32: 4 buffers of TILE_N * Hp * 4 bytes.
    cap = max(8, vmem_budget_bytes // (4 * 4 * hp))
    limit = min(n, target_rows, cap)
    best = None
    t = 8
    while t <= limit:
        if n % t == 0:
            best = t
        t += 8
    return best if best is not None else n   # fall back to full-N block


@partial(jax.jit, static_argnames=("interpret",))
def layerscale_module(hidden_states, emb, params, *, interpret=False):
    """Fused forward of LayerScaleModule (eval-mode BatchNorm)."""
    x = hidden_states.astype(jnp.float32)
    emb = emb.astype(jnp.float32)
    B, N, H = x.shape

    # --- per-batch conditioning: ONE fused (B,E)@(E,5H) matmul on SiLU(emb) ---
    s = emb * jax.nn.sigmoid(emb)                                          # SiLU
    w_cat = jnp.concatenate(
        [params["w_move"], params["w_rp1"], params["w_rp2"],
         params["w_alpha"], params["w_ls"]], axis=1)                       # (E, 5H)
    b_cat = jnp.concatenate(
        [params["b_move"], params["b_rp1"], params["b_rp2"],
         params["b_alpha"], params["b_ls"]])                               # (5H,)
    m_all = s @ w_cat + b_cat                                              # (B, 5H)
    m_move, m_rp1, m_rp2, alpha, m_ls = jnp.split(m_all, 5, axis=1)

    # --- fold eval-mode BatchNorm affine into dense weight / constants ---
    bn_scale = params["bn_gamma"] * jax.lax.rsqrt(params["bn_var"] + params["bn_eps"])
    bn_shift = params["bn_beta"] - params["bn_mean"] * bn_scale
    w_fused = params["w_dense"].T * bn_scale[None, :]                      # (H, H)
    c0 = params["b_dense"] * bn_scale + bn_shift                           # (H,)

    # Residual fold: (x + m_move) @ (W + I) = (x + m_move) @ W + x + m_move,
    # so add_post absorbs "- m_move" and the kernel drops one elementwise add.
    cond = jnp.stack(
        [m_move,                                   # add_in
         c0[None, :] + m_rp1 - m_move,             # add_post (residual-fold compensated)
         alpha,                                    # coef_pos
         params["prelu_a"][None, :] * alpha,       # coef_neg
         m_rp2 * alpha + m_ls],                    # offset
        axis=1).astype(jnp.float32)                                        # (B, 5, H)

    # --- lane-dense layout: pad H up to a multiple of 128 (padded lanes stay 0) ---
    Hp = ((H + 127) // 128) * 128
    if Hp != H:
        pad = Hp - H
        x = jnp.pad(x, ((0, 0), (0, 0), (0, pad)))
        cond = jnp.pad(cond, ((0, 0), (0, 0), (0, pad)))
        w_fused = jnp.pad(w_fused, ((0, pad), (0, pad)))
    w_fused = w_fused + jnp.eye(Hp, dtype=jnp.float32)                     # residual fold

    tile_n = _pick_tile_n(N, Hp)
    grid = (B, N // tile_n)

    # Explicit VMEM budget: x/out double-buffered + cond double-buffered + resident weight.
    vmem_bytes = 4 * (2 * 2 * tile_n * Hp + 2 * 5 * Hp + Hp * Hp)
    vmem_limit = int(min(96 * 2**20, max(8 * 2**20, 2 * vmem_bytes)))

    grid_spec = pltpu.PrefetchScalarGridSpec(
        num_scalar_prefetch=0,
        grid=grid,
        in_specs=[
            pl.BlockSpec((None, tile_n, Hp), lambda b, n: (b, n, 0)),   # x rows
            pl.BlockSpec((None, 5, Hp), lambda b, n: (b, 0, 0)),        # per-batch cond
            pl.BlockSpec((Hp, Hp), lambda b, n: (0, 0)),                # fused dense W (resident)
        ],
        out_specs=pl.BlockSpec((None, tile_n, Hp), lambda b, n: (b, n, 0)),
    )

    cost = pl.CostEstimate(
        flops=2 * B * N * Hp * Hp + 6 * B * N * Hp,
        transcendentals=0,
        bytes_accessed=4 * (2 * B * N * Hp + Hp * Hp + B * 5 * Hp),
    )

    out = pl.pallas_call(
        _layerscale_module_kernel,
        out_shape=jax.ShapeDtypeStruct((B, N, Hp), hidden_states.dtype),
        grid_spec=grid_spec,
        compiler_params=pltpu.CompilerParams(
            dimension_semantics=("parallel", "parallel"),
            vmem_limit_bytes=vmem_limit),
        cost_estimate=cost,
        interpret=interpret,
    )(x, cond, w_fused)

    return out[..., :H] if Hp != H else out


# -----------------------------------------------------------------------------
# Pure-JAX reference (straightforward translation of the PyTorch forward)
# -----------------------------------------------------------------------------
def layerscale_module_reference(x, emb, params):
    s = emb * jax.nn.sigmoid(emb)
    lin = lambda w, b: s @ w + b
    m_move = lin(params["w_move"], params["b_move"])
    m_rp1 = lin(params["w_rp1"], params["b_rp1"])
    m_rp2 = lin(params["w_rp2"], params["b_rp2"])
    alpha = lin(params["w_alpha"], params["b_alpha"])
    m_ls = lin(params["w_ls"], params["b_ls"])

    d = (x + m_move[:, None, :]) @ params["w_dense"].T + params["b_dense"]
    bn = ((d - params["bn_mean"]) * jax.lax.rsqrt(params["bn_var"] + params["bn_eps"])
          * params["bn_gamma"] + params["bn_beta"])
    r = bn + x                                                   # residual
    y = r + m_rp1[:, None, :]
    z = jnp.where(y >= 0, y, params["prelu_a"][None, None, :] * y) + m_rp2[:, None, :]
    return z * alpha[:, None, :] + m_ls[:, None, :]


# -----------------------------------------------------------------------------
# Deterministic parameters / test
# -----------------------------------------------------------------------------
def make_params(key, H, E):
    ks = jax.random.split(key, 12)
    nrm = lambda k, shape, scale=1.0: scale * jax.random.normal(k, shape, dtype=jnp.float32)
    return {
        # dense: nn.Linear(H, H) -> weight (out, in), bias (out,)
        "w_dense": nrm(ks[0], (H, H), 1.0 / (H ** 0.5)),
        "b_dense": nrm(ks[1], (H,), 0.05),
        # Conditioning linears stored as (E, H) (transposed vs nn.Linear).
        "w_move": nrm(ks[2], (E, H), 0.02), "b_move": nrm(ks[3], (H,), 0.02),
        "w_rp1": nrm(ks[4], (E, H), 0.02), "b_rp1": nrm(ks[5], (H,), 0.02),
        "w_rp2": nrm(ks[6], (E, H), 0.02), "b_rp2": nrm(ks[7], (H,), 0.02),
        "w_alpha": nrm(ks[8], (E, H), 0.02), "b_alpha": nrm(ks[9], (H,), 0.02),
        "w_ls": nrm(ks[10], (E, H), 0.02), "b_ls": nrm(ks[11], (H,), 0.02),
        # BatchNormT (eval mode, running buffers)
        "bn_gamma": jnp.ones((H,), jnp.float32) + 0.1 * nrm(jax.random.fold_in(key, 100), (H,)),
        "bn_beta": 0.1 * nrm(jax.random.fold_in(key, 101), (H,)),
        "bn_mean": 0.1 * nrm(jax.random.fold_in(key, 102), (H,)),
        "bn_var": jnp.abs(nrm(jax.random.fold_in(key, 103), (H,))) + 0.5,
        "bn_eps": jnp.float32(1e-5),
        # nn.PReLU(H) default init
        "prelu_a": jnp.full((H,), 0.25, jnp.float32),
    }


if __name__ == "__main__":
    key = jax.random.PRNGKey(0)

    def run_case(case_key, B, N, H, E):
        kx, ke, kp = jax.random.split(case_key, 3)
        x = jax.random.normal(kx, (B, N, H), dtype=jnp.float32)
        emb = jax.random.normal(ke, (B, E), dtype=jnp.float32)
        params = make_params(kp, H, E)

        out = jax.block_until_ready(layerscale_module(x, emb, params))
        ref = layerscale_module_reference(x, emb, params)

        assert out.shape == (B, N, H)
        max_err = float(jnp.max(jnp.abs(out - ref)))
        assert max_err < 1e-4, f"mismatch vs reference (max abs err {max_err})"

    # Case 1: lane-dense embedding_dim (H = 128), emb_chn = 32.
    run_case(jax.random.fold_in(key, 0), B=2, N=16, H=128, E=32)
    # Case 2: H = 64 exercises the wrapper-side pad-to-128 path and TILE_N == N.
    run_case(jax.random.fold_in(key, 1), B=2, N=8, H=64, E=16)

    print("KERNEL_OK")
</pallas_src>

<mosaic_0001>
module attributes {stable_mosaic.version = 11 : i64} {
  func.func @_layerscale_module_kernel(%arg0: i32, %arg1: i32, %arg2: memref<1x16x128xf32, #tpu.memory_space<vmem>>, %arg3: memref<1x5x128xf32, #tpu.memory_space<vmem>>, %arg4: memref<128x128xf32, #tpu.memory_space<vmem>>, %arg5: memref<1x16x128xf32, #tpu.memory_space<vmem>>) attributes {dimension_semantics = [#tpu.dimension_semantics<parallel>, #tpu.dimension_semantics<parallel>], iteration_bounds = array<i64: 2, 1>, scalar_prefetch = 0 : i64, scratch_operands = 0 : i64, tpu.core_type = #tpu.core_type<tc>, window_params = [{transform_indices = @transform_0, window_bounds = array<i64: 1, 16, 128>}, {transform_indices = @transform_1, window_bounds = array<i64: 1, 5, 128>}, {pipeline_mode = #tpu.pipeline_mode<synchronous>, transform_indices = @transform_2, window_bounds = array<i64: 128, 128>}, {transform_indices = @transform_3, window_bounds = array<i64: 1, 16, 128>}]} {
    %c0 = arith.constant 0 : index
    %c0_0 = arith.constant 0 : index
    %c0_1 = arith.constant 0 : index
    %0 = vector.load %arg2[%c0, %c0_0, %c0_1] : memref<1x16x128xf32, #tpu.memory_space<vmem>>, vector<1x16x128xf32>
    %1 = vector.shape_cast %0 : vector<1x16x128xf32> to vector<16x128xf32>
    %c0_2 = arith.constant 0 : index
    %c0_3 = arith.constant 0 : index
    %c0_4 = arith.constant 0 : index
    %2 = vector.load %arg3[%c0_2, %c0_3, %c0_4] : memref<1x5x128xf32, #tpu.memory_space<vmem>>, vector<1x5x128xf32>
    %3 = vector.shape_cast %2 : vector<1x5x128xf32> to vector<5x128xf32>
    %4 = vector.extract_strided_slice %3 {offsets = [0, 0], sizes = [1, 128], strides = [1, 1]} : vector<5x128xf32> to vector<1x128xf32>
    %5 = vector.extract_strided_slice %3 {offsets = [1, 0], sizes = [1, 128], strides = [1, 1]} : vector<5x128xf32> to vector<1x128xf32>
    %6 = vector.extract_strided_slice %3 {offsets = [2, 0], sizes = [1, 128], strides = [1, 1]} : vector<5x128xf32> to vector<1x128xf32>
    %7 = vector.extract_strided_slice %3 {offsets = [3, 0], sizes = [1, 128], strides = [1, 1]} : vector<5x128xf32> to vector<1x128xf32>
    %8 = vector.extract_strided_slice %3 {offsets = [4, 0], sizes = [1, 128], strides = [1, 1]} : vector<5x128xf32> to vector<1x128xf32>
    %9 = vector.broadcast %4 : vector<1x128xf32> to vector<16x128xf32>
    %10 = arith.addf %1, %9 : vector<16x128xf32>
    %c0_5 = arith.constant 0 : index
    %c0_6 = arith.constant 0 : index
    %11 = vector.load %arg4[%c0_5, %c0_6] : memref<128x128xf32, #tpu.memory_space<vmem>>, vector<128x128xf32>
    %cst = arith.constant dense<0.000000e+00> : vector<16x128xf32>
    %12 = tpu.matmul %10, %11, %cst {dimension_numbers = #tpu.dot_dimension_numbers<[1], [0], [0], [1], [0, 0, 1, 1], [], []>} : vector<16x128xf32>, vector<128x128xf32>, vector<16x128xf32> -> vector<16x128xf32>
    %13 = vector.broadcast %5 : vector<1x128xf32> to vector<16x128xf32>
    %14 = arith.addf %12, %13 : vector<16x128xf32>
    %cst_7 = arith.constant 0.000000e+00 : f32
    %15 = vector.broadcast %cst_7 : f32 to vector<16x128xf32>
    %16 = arith.cmpf oge, %14, %15 : vector<16x128xf32>
    %17 = vector.shape_cast %6 : vector<1x128xf32> to vector<1x128xf32>
    %18 = vector.broadcast %17 : vector<1x128xf32> to vector<16x128xf32>
    %19 = vector.shape_cast %7 : vector<1x128xf32> to vector<1x128xf32>
    %20 = vector.broadcast %19 : vector<1x128xf32> to vector<16x128xf32>
    %21 = arith.select %16, %18, %20 : vector<16x128xi1>, vector<16x128xf32>
    %22 = arith.mulf %21, %14 : vector<16x128xf32>
    %23 = vector.broadcast %8 : vector<1x128xf32> to vector<16x128xf32>
    %24 = arith.addf %22, %23 : vector<16x128xf32>
    %c0_8 = arith.constant 0 : index
    %c0_9 = arith.constant 0 : index
    %c0_10 = arith.constant 0 : index
    %25 = vector.load %arg5[%c0_8, %c0_9, %c0_10] : memref<1x16x128xf32, #tpu.memory_space<vmem>>, vector<1x16x128xf32>
    %26 = vector.shape_cast %25 : vector<1x16x128xf32> to vector<16x128xf32>
    %27 = vector.shape_cast %24 : vector<16x128xf32> to vector<1x16x128xf32>
    tpu.vector_store %arg5[%c0_8, %c0_9, %c0_10], %27 {strides = array<i32>} : memref<1x16x128xf32, #tpu.memory_space<vmem>>, vector<1x16x128xf32>,
    return
  }
  func.func @transform_0(%arg0: i32, %arg1: i32) -> (i32, i32, i32) {
    %c0_i32 = arith.constant 0 : i32
    %c0_i32_0 = arith.constant 0 : i32
    return %arg0, %arg1, %c0_i32 : i32, i32, i32
  }
  func.func @transform_1(%arg0: i32, %arg1: i32) -> (i32, i32, i32) {
    %c0_i32 = arith.constant 0 : i32
    %c0_i32_0 = arith.constant 0 : i32
    %c0_i32_1 = arith.constant 0 : i32
    return %arg0, %c0_i32, %c0_i32_0 : i32, i32, i32
  }
  func.func @transform_2(%arg0: i32, %arg1: i32) -> (i32, i32) {
    %c0_i32 = arith.constant 0 : i32
    %c0_i32_0 = arith.constant 0 : i32
    %c0_i32_1 = arith.constant 0 : i32
    return %c0_i32, %c0_i32_0 : i32, i32
  }
  func.func @transform_3(%arg0: i32, %arg1: i32) -> (i32, i32, i32) {
    %c0_i32 = arith.constant 0 : i32
    %c0_i32_0 = arith.constant 0 : i32
    return %arg0, %arg1, %c0_i32 : i32, i32, i32
  }
}

</mosaic_0001>

<bundles_post_ra>
// kernel: custom-call
= control target key start
LH: loop header
LB: loop body
LE: loop exit
PB: predicated region body
PF: predicated region fallthrough
CT: control target
= control target key end

     0   :  { %s6_s0 = inlined_call_operand.vmem [shape: f32[640], index: 0, kind: output, shape index: {}]  }

// kernel: layerscale_module.1
= control target key start
LH: loop header
LB: loop body
LE: loop exit
PB: predicated region body
PF: predicated region fallthrough
CT: control target
= control target key end

     0   :  { %8 = vsyncpa [#allocation3], 0  ;;  %s853_s0 = inlined_call_operand.vmem [shape: f32[2,16,128], index: 0, kind: input, shape index: {}]   ;;  %s854_s1 = inlined_call_operand.vmem [shape: f32[2,5,128], index: 1, kind: input, shape index: {}]   ;;  %s855_s2 = inlined_call_operand.vmem [shape: f32[128,128], index: 2, kind: input, shape index: {}]   ;;  %s856_s3 = inlined_call_operand.hbm [shape: f32[2,16,128], index: 3, kind: output, shape index: {}]  }
   0x1   :  { %10 = vsyncpa [#allocation3 + $0x1], 0  ;;  %s677_s12 = smov 0   ;;  %s679_s13 = smov 0  }
   0x2   :  { %s681_s14 = smov 0   ;;  %s683_s15 = smov 0  }
   0x3   :  { %s685_s16 = smov 0   ;;  %s687_s17 = smov 0  }
   0x4 LB: > { %s450_s18 = sadd.s32 4294967295, %s652_s17   ;;  %s451_s19 = sadd.s32 4294967294, %s652_s17   ;;  %s652_s17 = sphi %s687_s17, %s16_s17   ;;  %s648_s16 = sphi %s685_s16, %s863_s16   ;;  %s644_s15 = sphi %s683_s15, %s862_s15   ;;  %s640_s14 = sphi %s681_s14, %s861_s14   ;;  %s636_s13 = sphi %s679_s13, %s860_s13   ;;  %s632_s12 = sphi %s677_s12, %s859_s12  }
   0x5   : > { %s28_s20 = sadd.s32 1, %s648_s16  ;;  %s112_s21 = sadd.s32 1, %s640_s14 }
   0x6   : > { %p30_p0 = scmp.ge.s32.totalorder %s28_s20, 2  ;;  %p122_p1 = scmp.ne.s32.totalorder %s640_s14, %s636_s13 }
   0x7   : > { %p123_p2 = scmp.eq.s32.totalorder %s450_s18, 1  ;;  %p128_p3 = scmp.ne.s32.totalorder %s636_s13, %s632_s12 }
   0x8   : > { %s865_s20 = smov (%p30_p0, %s28_s20), 0  ;;  %p129_p5 = scmp.eq.s32.totalorder %s451_s19, 1 }
   0x9   : > { %p717_p4 = por %p123_p2, %p122_p1  ;;  %s107_s23 = ssub.s32 %s648_s16, %s865_s20 }
   0xa   : > { %p454_p6 = scmp.ge.s32.totalorder %s652_s17, 1  ;;  %p110_p7 = scmp.eq.s32.totalorder %s107_s23, 0 }
   0xb   : > { %p724_p8 = por %p129_p5, %p128_p3  ;;  %p170_p9 = scmp.lt.s32.totalorder %s652_s17, 3 }
   0xc   : > { %s730_s25 = scalar_select %p110_p7, %s640_s14, %s112_s21  }
   0xd   : > { %p171_p10 = pnand %p454_p6, %p170_p9 }
   0xe   : > { %p203_p11 = scmp.lt.s32.totalorder (!%p171_p10), %s644_s15, 1  ;;  %s199_s7 = sand.u32 (!%p171_p10), 1, %s636_s13  }
   0xf   : > { %174 = sbr.rel (%p171_p10) target bundleno = 270 (0x10e), region = 32  ;;  %s465_s10 = sshll.u32 (!%p171_p10), %s644_s15, 8 }
  0x10   : > { %s806_s21 = scalar_lea.hbm (!%p171_p10), %s856_s3, %s465_s10 }
  0x14   : > { %v241_v0 = vld [vmem:[%s855_s2 + $0x78] sm:$0xff]  ;;  %v240_v1 = vld [vmem:[%s855_s2 + $0x70] sm:$0xff]  ;;  %v220_v2 = vlaneseq  ;;  %v239_v3 = vld [vmem:[%s855_s2 + $0x68] sm:$0xff]  ;;  %s204_s5 = scalar_select %p203_p11, %s644_s15, 1 }
  0x15   : > { %484 = vmatprep.subr.mxu0 %v241_v0  ;;  %v238_v5 = vld [vmem:[%s855_s2 + $0x60] sm:$0xff]  ;;  %v237_v7 = vld [vmem:[%s855_s2 + $0x58] sm:$0xff]  ;;  %v236_v11 = vld [vmem:[%s855_s2 + $0x50] sm:$0xff]  ;;  %s654_s15 = smov [#allocation2]  }
  0x16   : > { %485 = vmatpush3.msra.mxu0 %v241_v0  ;;  %v743_v4 = vshrl.u32 %v220_v2, 7  ;;  %s464_s8 = sshll.u32 %s204_s5, 4  ;;  %s458_s9 = sshll.u32 %s204_s5, 3  ;;  %v235_v13 = vld [vmem:[%s855_s2 + $0x48] sm:$0xff]  ;;  %v234_v14 = vld [vmem:[%s855_s2 + $0x40] sm:$0xff]  ;;  %v233_v15 = vld [vmem:[%s855_s2 + $0x38] sm:$0xff] }
  0x17   : > { %486 = vmatprep.subr.mxu0 %v240_v1  ;;  %s752_s18 = scalar_lea.vmem %s853_s0, %s464_s8  ;;  %s215_s23 = scalar_lea.vmem %s854_s1, %s458_s9  ;;  %v232_v16 = vld [vmem:[%s855_s2 + $0x30] sm:$0xff]  ;;  %v231_v17 = vld [vmem:[%s855_s2 + $0x28] sm:$0xff]  ;;  %v230_v18 = vld [vmem:[%s855_s2 + $0x20] sm:$0xff] }
  0x18   : > { %487 = vmatpush3.msra.mxu0 %v240_v1  ;;  %v222_v6 = vsub.s32 0, %v743_v4  ;;  %v217_v8 = vld [vmem:[%s752_s18] sm:$0xff]  ;;  %v229_v19 = vld [vmem:[%s855_s2 + $0x18] sm:$0xff]  ;;  %v228_v20 = vld [vmem:[%s855_s2 + $0x10] sm:$0xff]  ;;  %v244_v25 = vsub.s32 1, %v743_v4  ;;  %v325_v26 = vsub.s32 2, %v743_v4 }
  0x19   : > { %488 = vmatprep.subr.mxu0 %v239_v3  ;;  %v219_v9 = vld [vmem:[%s215_s23] sm:$0x1f]  ;;  %v227_v21 = vld [vmem:[%s855_s2 + $0x8] sm:$0xff]  ;;  %v329_v27 = vsub.s32 3, %v743_v4  ;;  %v337_v29 = vsub.s32 4, %v743_v4  ;;  %s808_s23 = scalar_lea.sflag [#allocation3], %s199_s7 }
  0x1a   : > { %489 = vmatpush3.msra.mxu0 %v239_v3  ;;  %v223_v10 = vrot.slane %v219_v9, %v222_v6  ;;  %v218_v22 = vld [vmem:[%s752_s18 + $0x8] sm:$0xff]  ;;  %v226_v23 = vld [vmem:[%s855_s2] sm:$0xff]  ;;  %v245_v28 = vrot.slane %v219_v9, %v244_v25  ;;  %s455_s18 = sshll.u32 %s199_s7, 4  ;;  %v326_v31 = vrot.slane %v219_v9, %v325_v26  ;;  %s580_s27 = sshll.u32 %s654_s15, 4  ;;  %s581_s27 = int_to_ptr.vmem [resolvable:$false] %s580_s27 }
  0x1b   : > { %490 = vmatprep.subr.mxu0 %v238_v5  ;;  %v330_v32 = vrot.slane %v219_v9, %v329_v27  ;;  %v338_v35 = vrot.slane %v219_v9, %v337_v29  ;;  %s201_s8 = scalar_lea.vmem [#allocation2], %s455_s18  ;;  %s582_s28 = scalar_lea.vmem %s581_s27, 512 }
  0x1c   : > { %491 = vmatpush3.msra.mxu0 %v238_v5  ;;  %v224_v12 = vadd.f32 %v223_v10, %v217_v8  ;;  %v225_v24 = vadd.f32 %v223_v10, %v218_v22  ;;  %s359_s9 = sshll.u32 %s201_s8, 4  ;;  %s801_s9 = int_to_ptr.vmem [resolvable:$true] %s359_s9 }
  0x1d   : > { %492 = vmatprep.subr.mxu0 %v237_v7  ;;  %s576_s26 = scalar_lea.vmem %s801_s9, 256  ;;  %p583_p1 = scmp.lt.s32.totalorder %s801_s9, %s581_s27 }
  0x1e   : > { %493 = vmatpush3.msra.mxu0 %v237_v7  ;;  %516 = vmatprep.mubr.f32.mxu0 %v224_v12  ;;  %p577_p12 = scmp.ne.s32.totalorder %s801_s9, %s576_s26  ;;  %p584_p2 = scmp.lt.s32.totalorder %s582_s28, %s576_s26 }
  0x1f   : > { %494 = vmatprep.subr.mxu0 %v236_v11 }
  0x20   : > { %495 = vmatpush3.msra.mxu0 %v236_v11  ;;  %p578_p13 = pnand %p577_p12, %p717_p4  ;;  %p585_p3 = por %p584_p2, %p583_p1 }
  0x21   : > { %496 = vmatprep.subr.mxu0 %v235_v13 }
  0x22   : > { %497 = vmatpush3.msra.mxu0 %v235_v13  ;;  %p579_p0 = pneg %p578_p13 }
  0x23   : > { %498 = vmatprep.subr.mxu0 %v234_v14 }
  0x24   : > { %499 = vmatpush3.msra.mxu0 %v234_v14  ;;  %p586_p5 = pnand %p585_p3, %p579_p0 }
  0x25   : > { %500 = vmatprep.subr.mxu0 %v233_v15 }
  0x26   : > { %501 = vmatpush3.msra.mxu0 %v233_v15 }
  0x27   : > { %502 = vmatprep.subr.mxu0 %v232_v16 }
  0x28   : > { %503 = vmatpush3.msra.mxu0 %v232_v16 }
  0x29   : > { %504 = vmatprep.subr.mxu0 %v231_v17 }
  0x2a   : > { %505 = vmatpush3.msra.mxu0 %v231_v17 }
  0x2b   : > { %506 = vmatprep.subr.mxu0 %v230_v18 }
  0x2c   : > { %507 = vmatpush3.msra.mxu0 %v230_v18 }
  0x2d   : > { %508 = vmatprep.subr.mxu0 %v229_v19 }
  0x2e   : > { %509 = vmatpush3.msra.mxu0 %v229_v19 }
  0x2f   : > { %510 = vmatprep.subr.mxu0 %v228_v20 }
  0x30   : > { %511 = vmatpush3.msra.mxu0 %v228_v20 }
  0x31   : > { %512 = vmatprep.subr.mxu0 %v227_v21 }
  0x32   : > { %513 = vmatpush3.msra.mxu0 %v227_v21 }
  0x33   : > { %514 = vmatprep.subr.mxu0 %v226_v23 }
  0x34   : > { %515 = vmatpush3.msra.mxu0 %v226_v23 }
  0x35   : > { %517 = vmatmul.mubr.f32.vlgmr.msra.gmra.mxu0 %v225_v24 }
  0xf5   : > { %v518_v30 = vpop.f32.mrf.mxu0 }
  0xf6   : > { %v318_v33 = vadd.f32 %v518_v30, %v245_v28 }
  0xf7   : > { %v312_v34 = vpop.f32.mrf.mxu0 }
  0xf8   : > { %vm322_vm0 = vcmp.ge.f32.partialorder %v318_v33, 0.0  ;;  %v313_v36 = vadd.f32 %v312_v34, %v245_v28 }
  0xf9   : > { %v332_v37 = vsel %vm322_vm0, %v326_v31, %v330_v32 }
  0xfa   : > { %v334_v38 = vmul.f32 %v332_v37, %v318_v33  ;;  %vm321_vm1 = vcmp.ge.f32.partialorder %v313_v36, 0.0 }
  0xfb   : > { %v331_v39 = vsel %vm321_vm1, %v326_v31, %v330_v32 }
  0xfc   : > { %v340_v40 = vadd.f32 %v338_v35, %v334_v38  ;;  %v333_v41 = vmul.f32 %v331_v39, %v313_v36 }
  0xfe   : > { %342 = vst [vmem:[%s201_s8 + $0x8] sm:$0xff] %v340_v40  ;;  %v339_v42 = vadd.f32 %v338_v35, %v333_v41 }
 0x100   : > { %341 = vst [vmem:[%s201_s8] sm:$0xff] %v339_v42 }
 0x101   : > { %589 = shalt.err (!%p586_p5)
}
 0x102   : > { %s590_s29 = scalar_lea.hbm %s806_s21, 256  ;;  %s594_s5 = scalar_lea.hbm %s856_s3, 512 }
 0x103   : > { %p591_p6 = scmp.ne.s32.totalorder %s806_s21, %s590_s29  ;;  %p595_p10 = scmp.lt.s32.totalorder %s806_s21, %s856_s3 }
 0x104   : > { %p596_p11 = scmp.lt.s32.totalorder %s594_s5, %s590_s29 }
 0x105   : > { %p592_p7 = pnand %p591_p6, %p717_p4 }
 0x106   : > { %p597_p12 = por %p596_p11, %p595_p10 }
 0x107   : > { %p593_p9 = pneg %p592_p7 }
 0x109   : > { %p598_p13 = pnand %p597_p12, %p593_p9 }
 0x10b   : > { %601 = shalt.err (!%p598_p13)
}
 0x10c   : > { %s655_s18 = smov 128   ;;  %s656_s8 = smov 8  }
 0x10d   : > { %519 = dma.vmem_to_hbm [thread:$0]  (%p717_p4), %s801_s9, 256, %s806_s21, %s808_s23, %s655_s18, %s655_s18, %s656_s8  }
 0x10e PF: > { %p525_p0 = scmp.ge.s32.totalorder %s652_s17, 2  ;;  %s374_s10 = sand.u32 1, %s632_s12  }
 0x10f   : > { %s375_s11 = scalar_lea.sflag [#allocation3], %s374_s10 }
 0x110   : > { %p522_p1 = pnand %p525_p0, %p724_p8 }
 0x112   : > { %p523_p2 = pneg %p522_p1 }
 0x114   : > { %627 = dma.done.wait (%p523_p2), %s375_s11, 256  }
 0x115   : > { %629 = vsyncadd (%p523_p2), %s375_s11, 4294967040  ;;  %s16_s17 = sadd.s32 1, %s652_s17   ;;  %s859_s12 = smov %s636_s13 }
 0x116   : > { %p13_p3 = scmp.ge.s32.totalorder %s16_s17, 4   ;;  %s860_s13 = smov %s640_s14 }
 0x117   : > { %s861_s14 = smov %s730_s25  ;;  %s862_s15 = smov %s648_s16 }
 0x118   : > { %s863_s16 = smov %s865_s20  ;;  %15 = sbr.rel (!%p13_p3) target bundleno = 4 (0x4), region = 70 }
 0x11d   :  { %380 = vsyncpa [#allocation3], 1 }
 0x11e   :  { %382 = vsyncpa [#allocation3 + $0x1], 1 }

</bundles_post_ra>
